<compile_context>
chip_gen: v7x
topology: tpu7x:2x2x1
jax: 0.10.0
libtpu: 0.0.40
codegen_flags: <defaults>
</compile_context>

<pallas_src>
import jax
import jax.numpy as jnp
from jax.experimental import pallas as pl
from jax.experimental.pallas import tpu as pltpu


def _round_up(x, m):
    return ((x + m - 1) // m) * m


def _embedder_kernel(idx_ref, fused_ref, o_ref):
    # idx_ref:   (TM, 1)              int32 element indices for this token tile
    # fused_ref: (VOCAB_P, D_MODEL)   precomputed  cbfv @ W^T + b, VMEM-resident
    # o_ref:     (TM, D_MODEL)
    idx = idx_ref[...]                                     # (TM, 1)
    tm = idx.shape[0]
    vocab_p = fused_ref.shape[0]

    # In-kernel gather as a one-hot matmul on the MXU; one_hot rows are exact
    # 0/1, so the dot selects a single fused row bit-exactly (modulo MXU f32
    # accumulation of zeros).
    cols = jax.lax.broadcasted_iota(jnp.int32, (tm, vocab_p), 1)
    one_hot = (idx == cols).astype(jnp.float32)            # (TM, VOCAB_P)
    o_ref[...] = jnp.dot(one_hot, fused_ref[...],
                         preferred_element_type=jnp.float32
                         ).astype(o_ref.dtype)


def make_fused_table(cbfv_table, w_t, bias):
    """Init-time helper (call ONCE, outside the per-step forward).

    Folds fc_mat2vec into the frozen embedding table:
        fused[v] = cbfv_table[v] @ W^T + b
    and zero-pads the vocab axis up to a multiple of 128 so the in-kernel
    one-hot intermediate stays lane-dense.
    """
    vocab, _ = cbfv_table.shape
    fused = (cbfv_table.astype(jnp.float32) @ w_t.astype(jnp.float32)
             + bias.astype(jnp.float32)[None, :])          # (vocab, d_model)
    vocab_p = _round_up(vocab, 128)
    return jnp.pad(fused, ((0, vocab_p - vocab), (0, 0)))  # (vocab_p, d_model)


@jax.jit
def embedder_forward(src, fused_table):
    """Pallas implementation of Embedder.forward.

    src:         (B, T) int32 element indices (0 == padding / zero row)
    fused_table: (vocab_p, d_model) float32 from make_fused_table()
    returns:     (B, T, d_model) float32
    """
    B, T = src.shape
    vocab_p, d_model = fused_table.shape
    n_tok = B * T

    # Token tile: 256 for large inputs (amortize per-step overhead), 128 for
    # small ones so the grid has >=4 steps (>=2 per TensorCore on v7x).
    tm = 256 if n_tok >= 1024 else 128
    tm = min(tm, _round_up(n_tok, 8))
    grid = (pl.cdiv(n_tok, tm),)

    idx = src.reshape(n_tok, 1).astype(jnp.int32)

    cost = pl.CostEstimate(
        flops=2 * n_tok * vocab_p * d_model,
        transcendentals=0,
        bytes_accessed=(n_tok * 4                 # idx
                        + vocab_p * d_model * 4   # fused table
                        + n_tok * d_model * 4),   # output
    )

    out = pl.pallas_call(
        _embedder_kernel,
        out_shape=jax.ShapeDtypeStruct((n_tok, d_model), jnp.float32),
        grid_spec=pltpu.PrefetchScalarGridSpec(
            num_scalar_prefetch=0,
            grid=grid,
            in_specs=[
                pl.BlockSpec((tm, 1), lambda i: (i, 0)),               # idx
                pl.BlockSpec((vocab_p, d_model), lambda i: (0, 0)),    # fused
            ],
            out_specs=pl.BlockSpec((tm, d_model), lambda i: (i, 0)),
        ),
        compiler_params=pltpu.CompilerParams(
            dimension_semantics=("parallel",),
        ),
        cost_estimate=cost,
    )(idx, fused_table)

    return out.reshape(B, T, d_model)


if __name__ == "__main__":
    # ---- Small, deterministic synthetic setup -------------------------------
    # Real mat2vec is ~200-dim over ~118 elements; use those sizes so the
    # non-128-multiple feat, the vocab padding (119 -> 128), and the masked
    # partial final token block (400 tokens, tm=128 -> grid of 4) are all
    # exercised.
    B, T = 4, 100        # 400 tokens -> 4 grid steps of 128 (last one partial)
    n_elements = 118     # periodic-table-sized "vocab" (plus zero row = 119)
    feat = 200           # CBFV feature size (not a multiple of 128 on purpose)
    d_model = 256        # Embedder d_model (lane-aligned output)

    key = jax.random.PRNGKey(0)
    k_cbfv, k_w, k_b, k_src = jax.random.split(key, 4)

    # Frozen embedding table: zero row (index 0) + random mat2vec rows.
    cbfv_rows = jax.random.normal(k_cbfv, (n_elements, feat), dtype=jnp.float32)
    cbfv_table = jnp.concatenate(
        [jnp.zeros((1, feat), dtype=jnp.float32), cbfv_rows], axis=0
    )  # (vocab = n_elements + 1, feat)

    # nn.Linear(feat, d_model) parameters (uniform init like torch).
    bound = 1.0 / (feat ** 0.5)
    w = jax.random.uniform(k_w, (d_model, feat), jnp.float32, -bound, bound)
    b = jax.random.uniform(k_b, (d_model,), jnp.float32, -bound, bound)
    w_t = w.T  # (feat, d_model) for x @ W^T

    # src: integer element indices, 0 = padding row.
    src = jax.random.randint(k_src, (B, T), 0, n_elements + 1, dtype=jnp.int32)

    # ---- Init-time fusion (done once, hoisted out of the forward path) ------
    fused_table = jax.block_until_ready(make_fused_table(cbfv_table, w_t, b))

    # ---- Run kernel ----------------------------------------------------------
    out = embedder_forward(src, fused_table)
    out = jax.block_until_ready(out)

    # ---- Reference check (pure JAX, mirrors the PyTorch forward) -------------
    ref = jnp.take(cbfv_table, src.reshape(-1), axis=0) @ w.T + b
    ref = ref.reshape(B, T, d_model)

    assert out.shape == (B, T, d_model)
    assert out.dtype == jnp.float32
    # Tolerance covers MXU f32-pass / accumulation-order differences between
    # the fused (table @ W^T then gather) path and the reference.
    assert jnp.allclose(out, ref, atol=1e-4, rtol=1e-4), "mismatch vs reference"

    print("KERNEL_OK")
</pallas_src>

<mosaic_0001>
module attributes {stable_mosaic.version = 11 : i64} {
  func.func @_embedder_kernel(%arg0: i32, %arg1: memref<128x1xi32, #tpu.memory_space<vmem>>, %arg2: memref<128x256xf32, #tpu.memory_space<vmem>>, %arg3: memref<128x256xf32, #tpu.memory_space<vmem>>) attributes {dimension_semantics = [#tpu.dimension_semantics<parallel>], iteration_bounds = array<i64: 4>, scalar_prefetch = 0 : i64, scratch_operands = 0 : i64, tpu.core_type = #tpu.core_type<tc>, window_params = [{transform_indices = @transform_0, window_bounds = array<i64: 128, 1>}, {pipeline_mode = #tpu.pipeline_mode<synchronous>, transform_indices = @transform_1, window_bounds = array<i64: 128, 256>}, {transform_indices = @transform_2, window_bounds = array<i64: 128, 256>}]} {
    %c0 = arith.constant 0 : index
    %c0_0 = arith.constant 0 : index
    %0 = vector.load %arg1[%c0, %c0_0] : memref<128x1xi32, #tpu.memory_space<vmem>>, vector<128x1xi32>
    %1 = tpu.iota {dimensions = array<i32: 1>} : vector<128x128xi32>
    %2 = vector.broadcast %0 : vector<128x1xi32> to vector<128x128xi32>
    %3 = arith.cmpi eq, %2, %1 : vector<128x128xi32>
    %4 = arith.extui %3 : vector<128x128xi1> to vector<128x128xi32>
    %5 = arith.sitofp %4 : vector<128x128xi32> to vector<128x128xf32>
    %c0_1 = arith.constant 0 : index
    %c0_2 = arith.constant 0 : index
    %6 = vector.load %arg2[%c0_1, %c0_2] : memref<128x256xf32, #tpu.memory_space<vmem>>, vector<128x256xf32>
    %cst = arith.constant dense<0.000000e+00> : vector<128x256xf32>
    %7 = tpu.matmul %5, %6, %cst {dimension_numbers = #tpu.dot_dimension_numbers<[1], [0], [0], [1], [0, 0, 1, 1], [], []>} : vector<128x128xf32>, vector<128x256xf32>, vector<128x256xf32> -> vector<128x256xf32>
    %c0_3 = arith.constant 0 : index
    %c0_4 = arith.constant 0 : index
    %8 = vector.load %arg3[%c0_3, %c0_4] : memref<128x256xf32, #tpu.memory_space<vmem>>, vector<128x256xf32>
    tpu.vector_store %arg3[%c0_3, %c0_4], %7 {strides = array<i32>} : memref<128x256xf32, #tpu.memory_space<vmem>>, vector<128x256xf32>,
    return
  }
  func.func @transform_0(%arg0: i32) -> (i32, i32) {
    %c0_i32 = arith.constant 0 : i32
    %c0_i32_0 = arith.constant 0 : i32
    return %arg0, %c0_i32 : i32, i32
  }
  func.func @transform_1(%arg0: i32) -> (i32, i32) {
    %c0_i32 = arith.constant 0 : i32
    %c0_i32_0 = arith.constant 0 : i32
    %c0_i32_1 = arith.constant 0 : i32
    return %c0_i32, %c0_i32_0 : i32, i32
  }
  func.func @transform_2(%arg0: i32) -> (i32, i32) {
    %c0_i32 = arith.constant 0 : i32
    %c0_i32_0 = arith.constant 0 : i32
    return %arg0, %c0_i32 : i32, i32
  }
}

</mosaic_0001>

<bundles_post_ra>
// kernel: embedder_forward.1
= control target key start
LH: loop header
LB: loop body
LE: loop exit
PB: predicated region body
PF: predicated region fallthrough
CT: control target
= control target key end

     0   :  { %s1035_s9 = smov 0   ;;  %s1037_s10 = smov 0   ;;  %s1398_s0 = inlined_call_operand.vmem [shape: s32[400,1], index: 0, kind: input, shape index: {}]   ;;  %s1399_s1 = inlined_call_operand.vmem [shape: f32[128,256], index: 1, kind: input, shape index: {}]   ;;  %s1400_s2 = inlined_call_operand.vmem [shape: f32[400,256], index: 2, kind: output, shape index: {}]  }
   0x1   :  { %s1039_s11 = smov 0  }
   0x2 LB: > { %s1048_s12 = sadd.s32 4294967295, %s983_s11   ;;  %s1050_s13 = sadd.s32 1, %s983_s11   ;;  %s983_s11 = sphi %s1039_s11, %s1409_s11   ;;  %s979_s10 = sphi %s1037_s10, %s1408_s10   ;;  %s975_s9 = sphi %s1035_s9, %s1407_s9  }
   0x3   : > { %s63_s14 = ssub.s32 %s983_s11, %s1050_s13  ;;  %s66_s15 = sadd.s32 1, %s979_s10 }
   0x4   : > { %p64_p0 = scmp.eq.s32.totalorder %s63_s14, 0  ;;  %p76_p1 = scmp.ne.s32.totalorder %s979_s10, %s975_s9 }
   0x5   : > { %p77_p2 = scmp.eq.s32.totalorder %s1048_s12, 3  ;;  %p728_p3 = scmp.ge.s32.totalorder %s983_s11, 1 }
   0x6   : > { %s1058_s16 = scalar_select %p64_p0, %s979_s10, %s66_s15  }
   0x7   : > { %p1060_p4 = por %p77_p2, %p76_p1  ;;  %p121_p5 = scmp.lt.s32.totalorder %s983_s11, 5 }
   0x9   : > { %p122_p6 = pnand %p728_p3, %p121_p5 }
   0xa   : > { %s1065_s18 = sshll.u32 (!%p122_p6), %s1048_s12, 4  ;;  %v281_v0 = vld [vmem:[%s1399_s1 + $0x8] sm:$0xff] (!%p122_p6)  ;;  %v283_v1 = vld [vmem:[%s1399_s1 + $0x18] sm:$0xff] (!%p122_p6)  ;;  %v280_v2 = vld [vmem:[%s1399_s1] sm:$0xff] (!%p122_p6)  ;;  %v1017_v3 = vmov (!%p122_p6), 0   ;;  %v1018_v30 = vmov (!%p122_p6), 0.0  }
   0xb   : > { %125 = sbr.rel (%p122_p6) target bundleno = 454 (0x1c6), region = 28  ;;  %928 = vset.pattern.permute.xlu1 (!%p122_p6), %v1017_v3  ;;  %927 = vset.pattern.permute.xlu0 (!%p122_p6), %v1017_v3  ;;  %p151_p7 = scmp.lt.s32.totalorder (!%p122_p6), %s1065_s18, 49  ;;  %v788_v4 = vpack.c.bf16 (!%p122_p6), %v283_v1, %v281_v0  ;;  %v282_v5 = vld [vmem:[%s1399_s1 + $0x10] sm:$0xff] (!%p122_p6)  ;;  %v285_v6 = vld [vmem:[%s1399_s1 + $0x28] sm:$0xff] (!%p122_p6)  ;;  %v287_v7 = vld [vmem:[%s1399_s1 + $0x38] sm:$0xff] (!%p122_p6) }
   0xc   : > { %v790_v8 = vpack.c.bf16 (!%p122_p6), %v282_v5, %v280_v2  ;;  %v792_v9 = vpack.c.bf16 (!%p122_p6), %v287_v7, %v285_v6  ;;  %v284_v10 = vld [vmem:[%s1399_s1 + $0x20] sm:$0xff] (!%p122_p6)  ;;  %v286_v11 = vld [vmem:[%s1399_s1 + $0x30] sm:$0xff] (!%p122_p6)  ;;  %v289_v12 = vld [vmem:[%s1399_s1 + $0x48] sm:$0xff] (!%p122_p6)  ;;  %376 = vmatprep.mubr.f32.mxu0 (!%p122_p6), %v1018_v30  ;;  %424 = vmatprep.mubr.f32.mxu1 (!%p122_p6), %v1018_v30  ;;  %v182_v2 = vlaneseq (!%p122_p6)  ;;  %v1019_v6 = vmov (!%p122_p6), 1.0  }
   0xd   : > { %789 = vmatprep.subr.bf16.mxu0 (!%p122_p6), %v788_v4  ;;  %820 = vmatprep.subr.bf16.mxu1 (!%p122_p6), %v788_v4  ;;  %v291_v13 = vld [vmem:[%s1399_s1 + $0x58] sm:$0xff] (!%p122_p6)  ;;  %v794_v14 = vpack.c.bf16 (!%p122_p6), %v286_v11, %v284_v10  ;;  %v288_v16 = vld [vmem:[%s1399_s1 + $0x40] sm:$0xff] (!%p122_p6)  ;;  %v290_v17 = vld [vmem:[%s1399_s1 + $0x50] sm:$0xff] (!%p122_p6) }
   0xe   : > { %791 = vmatpush1.bf16.msra.mxu0 (!%p122_p6), %v790_v8  ;;  %828 = vmatpush1.bf16.msra.mxu1 (!%p122_p6), %v790_v8  ;;  %v796_v15 = vpack.c.bf16 (!%p122_p6), %v291_v13, %v289_v12  ;;  %v293_v18 = vld [vmem:[%s1399_s1 + $0x68] sm:$0xff] (!%p122_p6)  ;;  %v295_v21 = vld [vmem:[%s1399_s1 + $0x78] sm:$0xff] (!%p122_p6)  ;;  %v798_v24 = vpack.c.bf16 (!%p122_p6), %v290_v17, %v288_v16  ;;  %v292_v26 = vld [vmem:[%s1399_s1 + $0x60] sm:$0xff] (!%p122_p6)  ;;  %v1188_v3 = vand.u32 (!%p122_p6), 127, %v182_v2 }
   0xf   : > { %793 = vmatprep.subr.bf16.mxu0 (!%p122_p6), %v792_v9  ;;  %821 = vmatprep.subr.bf16.mxu1 (!%p122_p6), %v792_v9  ;;  %v800_v25 = vpack.c.bf16 (!%p122_p6), %v295_v21, %v293_v18  ;;  %v294_v27 = vld [vmem:[%s1399_s1 + $0x70] sm:$0xff] (!%p122_p6)  ;;  %v297_v28 = vld [vmem:[%s1399_s1 + $0x88] sm:$0xff] (!%p122_p6)  ;;  %v299_v29 = vld [vmem:[%s1399_s1 + $0x98] sm:$0xff] (!%p122_p6) }
  0x10   : > { %v802_v33 = vpack.c.bf16 (!%p122_p6), %v294_v27, %v292_v26  ;;  %v804_v34 = vpack.c.bf16 (!%p122_p6), %v299_v29, %v297_v28  ;;  %v296_v35 = vld [vmem:[%s1399_s1 + $0x80] sm:$0xff] (!%p122_p6)  ;;  %v298_v36 = vld [vmem:[%s1399_s1 + $0x90] sm:$0xff] (!%p122_p6)  ;;  %v301_v37 = vld [vmem:[%s1399_s1 + $0xa8] sm:$0xff] (!%p122_p6) }
  0x11   : > { %v303_v38 = vld [vmem:[%s1399_s1 + $0xb8] sm:$0xff] (!%p122_p6)  ;;  %v806_v41 = vpack.c.bf16 (!%p122_p6), %v298_v36, %v296_v35  ;;  %v300_v43 = vld [vmem:[%s1399_s1 + $0xa0] sm:$0xff] (!%p122_p6)  ;;  %v302_v44 = vld [vmem:[%s1399_s1 + $0xb0] sm:$0xff] (!%p122_p6) }
  0x12   : > { %s152_s7 = scalar_select %p151_p7, %s1065_s18, 49  ;;  %795 = vmatpush1.bf16.msra.mxu0 %v794_v14  ;;  %829 = vmatpush1.bf16.msra.mxu1 %v794_v14  ;;  %v808_v42 = vpack.c.bf16 %v303_v38, %v301_v37  ;;  %v305_v45 = vld [vmem:[%s1399_s1 + $0xc8] sm:$0xff]  ;;  %v307_v46 = vld [vmem:[%s1399_s1 + $0xd8] sm:$0xff]  ;;  %v810_v49 = vpack.c.bf16 %v302_v44, %v300_v43  ;;  %v304_v51 = vld [vmem:[%s1399_s1 + $0xc0] sm:$0xff] }
  0x13   : > { %797 = vmatprep.subr.bf16.mxu0 %v796_v15  ;;  %822 = vmatprep.subr.bf16.mxu1 %v796_v15  ;;  %v812_v50 = vpack.c.bf16 %v307_v46, %v305_v45  ;;  %v306_v52 = vld [vmem:[%s1399_s1 + $0xd0] sm:$0xff]  ;;  %v309_v53 = vld [vmem:[%s1399_s1 + $0xe8] sm:$0xff]  ;;  %v311_v54 = vld [vmem:[%s1399_s1 + $0xf8] sm:$0xff]  ;;  %s785_s29 = sshll.u32 (%p1060_p4), %s1048_s12, 8 }
  0x14   : > { %s731_s19 = sshll.u32 %s152_s7, 3  ;;  %v814_v57 = vpack.c.bf16 %v306_v52, %v304_v51  ;;  %v816_v58 = vpack.c.bf16 %v311_v54, %v309_v53  ;;  %v308_v59 = vld [vmem:[%s1399_s1 + $0xe0] sm:$0xff]  ;;  %v310_v60 = vld [vmem:[%s1399_s1 + $0xf0] sm:$0xff]  ;;  %s1262_s4 = scalar_lea.vmem (%p1060_p4), %s1400_s2, %s785_s29  }
  0x15   : > { %s1102_s22 = scalar_lea.vmem %s1398_s0, %s731_s19  ;;  %v818_v63 = vpack.c.bf16 %v310_v60, %v308_v59 }
  0x16   : > { %v167_v19 = vld [vmem:[%s1102_s22 + $0x8] sm:$0xff]  ;;  %v166_v20 = vld [vmem:[%s1102_s22] sm:$0xff]  ;;  %v176_v31 = vld [vmem:[%s1102_s22 + $0x50] sm:$0xff]  ;;  %799 = vmatpush1.bf16.msra.mxu0 %v798_v24  ;;  %830 = vmatpush1.bf16.msra.mxu1 %v798_v24 }
  0x17   : > { %188 = vperm.xlu1 %928, %v167_v19   ;;  %185 = vperm.xlu0 %927, %v166_v20   ;;  %v175_v22 = vld [vmem:[%s1102_s22 + $0x48] sm:$0xff]  ;;  %v174_v23 = vld [vmem:[%s1102_s22 + $0x40] sm:$0xff]  ;;  %v168_v32 = vld [vmem:[%s1102_s22 + $0x10] sm:$0xff] }
  0x18   : > { %801 = vmatprep.subr.bf16.mxu0 %v800_v25  ;;  %823 = vmatprep.subr.bf16.mxu1 %v800_v25  ;;  %v177_v39 = vld [vmem:[%s1102_s22 + $0x58] sm:$0xff]  ;;  %v178_v47 = vld [vmem:[%s1102_s22 + $0x60] sm:$0xff]  ;;  %v179_v55 = vld [vmem:[%s1102_s22 + $0x68] sm:$0xff] }
  0x19   : > { %v169_v40 = vld [vmem:[%s1102_s22 + $0x18] sm:$0xff]  ;;  %v170_v48 = vld [vmem:[%s1102_s22 + $0x20] sm:$0xff]  ;;  %v171_v56 = vld [vmem:[%s1102_s22 + $0x28] sm:$0xff] }
  0x1a   : > { %803 = vmatpush1.bf16.msra.mxu0 %v802_v33  ;;  %831 = vmatpush1.bf16.msra.mxu1 %v802_v33  ;;  %v180_v61 = vld [vmem:[%s1102_s22 + $0x70] sm:$0xff]  ;;  %v181_v0 = vld [vmem:[%s1102_s22 + $0x78] sm:$0xff] }
  0x1b   : > { %212 = vperm.xlu1 %928, %v175_v22   ;;  %209 = vperm.xlu0 %927, %v174_v23   ;;  %v172_v62 = vld [vmem:[%s1102_s22 + $0x30] sm:$0xff]  ;;  %v173_v1 = vld [vmem:[%s1102_s22 + $0x38] sm:$0xff]  ;;  %s143_s22 = sand.u32 1, %s975_s9   ;;  %s513_s9 = ssub.s32 (%p1060_p4), 50, %s1065_s18 }
  0x1c   : > { %805 = vmatprep.subr.bf16.mxu0 %v804_v34  ;;  %824 = vmatprep.subr.bf16.mxu1 %v804_v34  ;;  %s729_s27 = sshll.u32 %s143_s22, 8  ;;  %p514_p8 = scmp.lt.s32.totalorder (%p1060_p4), %s513_s9, 16 }
  0x1d   : > { %s1221_s28 = scalar_lea.vmem [#allocation2], %s729_s27  }
  0x1e   : > { %807 = vmatpush1.bf16.msra.mxu0 %v806_v41  ;;  %832 = vmatpush1.bf16.msra.mxu1 %v806_v41 }
  0x1f   : > { %215 = vperm.xlu1 %928, %v176_v31   ;;  %191 = vperm.xlu0 %927, %v168_v32  }
  0x20   : > { %809 = vmatprep.subr.bf16.mxu0 %v808_v42  ;;  %825 = vmatprep.subr.bf16.mxu1 %v808_v42 }
  0x22   : > { %811 = vmatpush1.bf16.msra.mxu0 %v810_v49  ;;  %833 = vmatpush1.bf16.msra.mxu1 %v810_v49 }
  0x23   : > { %218 = vperm.xlu1 %928, %v177_v39   ;;  %194 = vperm.xlu0 %927, %v169_v40  }
  0x24   : > { %813 = vmatprep.subr.bf16.mxu0 %v812_v50  ;;  %826 = vmatprep.subr.bf16.mxu1 %v812_v50 }
  0x26   : > { %815 = vmatpush1.bf16.msra.mxu0 %v814_v57  ;;  %834 = vmatpush1.bf16.msra.mxu1 %v814_v57 }
  0x27   : > { %221 = vperm.xlu1 %928, %v178_v47   ;;  %197 = vperm.xlu0 %927, %v170_v48  }
  0x28   : > { %817 = vmatprep.subr.bf16.mxu0 %v816_v58  ;;  %827 = vmatprep.subr.bf16.mxu1 %v816_v58 }
  0x2a   : > { %819 = vmatpush1.bf16.msra.mxu0 %v818_v63  ;;  %835 = vmatpush1.bf16.msra.mxu1 %v818_v63 }
  0x2b   : > { %224 = vperm.xlu1 %928, %v179_v55   ;;  %200 = vperm.xlu0 %927, %v171_v56  }
  0x2f   : > { %227 = vperm.xlu1 %928, %v180_v61   ;;  %203 = vperm.xlu0 %927, %v172_v62  }
  0x33   : > { %230 = vperm.xlu1 %928, %v181_v0   ;;  %206 = vperm.xlu0 %927, %v173_v1  }
  0x96   : > { %v189_v4 = vpop.permute.xlu1 %188  ;;  %v186_v5 = vpop.permute.xlu0 %185 }
  0x97   : > { %vm232_vm0 = vcmp.eq.s32.totalorder %v186_v5, %v1188_v3  ;;  %vm233_vm1 = vcmp.eq.s32.totalorder %v189_v4, %v1188_v3 }
  0x98   : > { %748 = vmatmul.mubr.msk.f32.vlgmr.msra.gmra.mrb[0].mxu0 %vm232_vm0, %v1019_v6 }
  0x99   : > { %382 = vmatprep.mubr.f32.mxu0 %v1018_v30 }
  0x9a   : > { %v213_v7 = vpop.permute.xlu1 %212  ;;  %v210_v8 = vpop.permute.xlu0 %209 }
  0x9b   : > { %vm240_vm2 = vcmp.eq.s32.totalorder %v210_v8, %v1188_v3  ;;  %vm241_vm3 = vcmp.eq.s32.totalorder %v213_v7, %v1188_v3 }
  0x9c   : > { %749 = vmatmul.mubr.msk.f32.gmra.mrb[2].mxu0 %vm233_vm1, %v1019_v6  ;;  %756 = vmatmul.mubr.msk.f32.vlgmr.msra.gmra.mrb[0].mxu1 %vm240_vm2, %v1019_v6 }
  0x9d   : > { %388 = vmatprep.mubr.f32.mxu0 %v1018_v30  ;;  %430 = vmatprep.mubr.f32.mxu1 %v1018_v30 }
  0x9e   : > { %v216_v9 = vpop.permute.xlu1 %215  ;;  %v192_v10 = vpop.permute.xlu0 %191 }
  0x9f   : > { %vm234_vm4 = vcmp.eq.s32.totalorder %v192_v10, %v1188_v3  ;;  %vm242_vm5 = vcmp.eq.s32.totalorder %v216_v9, %v1188_v3 }
  0xa0   : > { %750 = vmatmul.mubr.msk.f32.gmra.mrb[4].mxu0 %vm234_vm4, %v1019_v6  ;;  %757 = vmatmul.mubr.msk.f32.gmra.mrb[2].mxu1 %vm241_vm3, %v1019_v6 }
  0xa1   : > { %394 = vmatprep.mubr.f32.mxu0 %v1018_v30  ;;  %436 = vmatprep.mubr.f32.mxu1 %v1018_v30 }
  0xa2   : > { %v219_v11 = vpop.permute.xlu1 %218  ;;  %v195_v12 = vpop.permute.xlu0 %194 }
  0xa3   : > { %vm235_vm6 = vcmp.eq.s32.totalorder %v195_v12, %v1188_v3  ;;  %vm243_vm7 = vcmp.eq.s32.totalorder %v219_v11, %v1188_v3 }
  0xa4   : > { %751 = vmatmul.mubr.msk.f32.gmra.mrb[6].mxu0 %vm235_vm6, %v1019_v6  ;;  %758 = vmatmul.mubr.msk.f32.gmra.mrb[4].mxu1 %vm242_vm5, %v1019_v6 }
  0xa5   : > { %400 = vmatprep.mubr.f32.mxu0 %v1018_v30  ;;  %442 = vmatprep.mubr.f32.mxu1 %v1018_v30 }
  0xa6   : > { %v222_v13 = vpop.permute.xlu1 %221  ;;  %v198_v14 = vpop.permute.xlu0 %197 }
  0xa7   : > { %vm236_vm8 = vcmp.eq.s32.totalorder %v198_v14, %v1188_v3  ;;  %vm244_vm9 = vcmp.eq.s32.totalorder %v222_v13, %v1188_v3 }
  0xa8   : > { %752 = vmatmul.mubr.msk.f32.gmra.mrb[8].mxu0 %vm236_vm8, %v1019_v6  ;;  %759 = vmatmul.mubr.msk.f32.gmra.mrb[6].mxu1 %vm243_vm7, %v1019_v6 }
  0xa9   : > { %406 = vmatprep.mubr.f32.mxu0 %v1018_v30  ;;  %448 = vmatprep.mubr.f32.mxu1 %v1018_v30 }
  0xaa   : > { %v225_v15 = vpop.permute.xlu1 %224  ;;  %v201_v16 = vpop.permute.xlu0 %200 }
  0xab   : > { %vm237_vm10 = vcmp.eq.s32.totalorder %v201_v16, %v1188_v3  ;;  %vm245_vm11 = vcmp.eq.s32.totalorder %v225_v15, %v1188_v3 }
  0xac   : > { %753 = vmatmul.mubr.msk.f32.gmra.mrb[10].mxu0 %vm237_vm10, %v1019_v6  ;;  %760 = vmatmul.mubr.msk.f32.gmra.mrb[8].mxu1 %vm244_vm9, %v1019_v6 }
  0xad   : > { %412 = vmatprep.mubr.f32.mxu0 %v1018_v30  ;;  %454 = vmatprep.mubr.f32.mxu1 %v1018_v30 }
  0xae   : > { %v228_v17 = vpop.permute.xlu1 %227  ;;  %v204_v18 = vpop.permute.xlu0 %203 }
  0xaf   : > { %vm238_vm12 = vcmp.eq.s32.totalorder %v204_v18, %v1188_v3  ;;  %vm246_vm13 = vcmp.eq.s32.totalorder %v228_v17, %v1188_v3 }
  0xb0   : > { %754 = vmatmul.mubr.msk.f32.gmra.mrb[12].mxu0 %vm238_vm12, %v1019_v6  ;;  %761 = vmatmul.mubr.msk.f32.gmra.mrb[10].mxu1 %vm245_vm11, %v1019_v6 }
  0xb1   : > { %418 = vmatprep.mubr.f32.mxu0 %v1018_v30  ;;  %460 = vmatprep.mubr.f32.mxu1 %v1018_v30 }
  0xb2   : > { %v207_v19 = vpop.permute.xlu0 %206  ;;  %v231_v20 = vpop.permute.xlu1 %230 }
  0xb3   : > { %vm239_vm14 = vcmp.eq.s32.totalorder %v207_v19, %v1188_v3  ;;  %vm247_vm15 = vcmp.eq.s32.totalorder %v231_v20, %v1188_v3 }
  0xb4   : > { %755 = vmatmul.mubr.msk.f32.gmra.mrb[14].mxu0 %vm239_vm14, %v1019_v6  ;;  %762 = vmatmul.mubr.msk.f32.gmra.mrb[12].mxu1 %vm246_vm13, %v1019_v6 }
  0xb5   : > { %466 = vmatprep.mubr.f32.mxu1 %v1018_v30 }
  0xb8   : > { %763 = vmatmul.mubr.msk.f32.gmra.mrb[14].mxu1 %vm247_vm15, %v1019_v6 }
 0x16b   : > { %v378_v21 = vpop.f32.mrb[0].mxu0 }
 0x16c   : > { %473 = vst [vmem:[%s1221_s28] sm:$0xff] %v378_v21  ;;  %v380_v22 = vpop.f32.mrb[1].mxu0 }
 0x16d   : > { %474 = vst [vmem:[%s1221_s28 + $0x8] sm:$0xff] %v380_v22 }
 0x16f   : > { %v384_v23 = vpop.f32.mrb[2].mxu0  ;;  %v426_v24 = vpop.f32.mrb[0].mxu1 }
 0x170   : > { %475 = vst [vmem:[%s1221_s28 + $0x10] sm:$0xff] %v384_v23  ;;  %489 = vst [vmem:[%s1221_s28 + $0x80] sm:$0xff] %v426_v24  ;;  %v386_v25 = vpop.f32.mrb[3].mxu0  ;;  %v428_v26 = vpop.f32.mrb[1].mxu1 }
 0x171   : > { %476 = vst [vmem:[%s1221_s28 + $0x18] sm:$0xff] %v386_v25  ;;  %490 = vst [vmem:[%s1221_s28 + $0x88] sm:$0xff] %v428_v26 }
 0x173   : > { %v390_v27 = vpop.f32.mrb[4].mxu0  ;;  %v432_v28 = vpop.f32.mrb[2].mxu1 }
 0x174   : > { %477 = vst [vmem:[%s1221_s28 + $0x20] sm:$0xff] %v390_v27  ;;  %491 = vst [vmem:[%s1221_s28 + $0x90] sm:$0xff] %v432_v28  ;;  %v392_v29 = vpop.f32.mrb[5].mxu0  ;;  %v434_v30 = vpop.f32.mrb[3].mxu1 }
 0x175   : > { %478 = vst [vmem:[%s1221_s28 + $0x28] sm:$0xff] %v392_v29  ;;  %492 = vst [vmem:[%s1221_s28 + $0x98] sm:$0xff] %v434_v30 }
 0x177   : > { %v396_v31 = vpop.f32.mrb[6].mxu0  ;;  %v438_v32 = vpop.f32.mrb[4].mxu1 }
 0x178   : > { %479 = vst [vmem:[%s1221_s28 + $0x30] sm:$0xff] %v396_v31  ;;  %493 = vst [vmem:[%s1221_s28 + $0xa0] sm:$0xff] %v438_v32  ;;  %v398_v33 = vpop.f32.mrb[7].mxu0  ;;  %v440_v34 = vpop.f32.mrb[5].mxu1 }
 0x179   : > { %480 = vst [vmem:[%s1221_s28 + $0x38] sm:$0xff] %v398_v33  ;;  %494 = vst [vmem:[%s1221_s28 + $0xa8] sm:$0xff] %v440_v34 }
 0x17b   : > { %v402_v35 = vpop.f32.mrb[8].mxu0  ;;  %v444_v36 = vpop.f32.mrb[6].mxu1 }
 0x17c   : > { %481 = vst [vmem:[%s1221_s28 + $0x40] sm:$0xff] %v402_v35  ;;  %495 = vst [vmem:[%s1221_s28 + $0xb0] sm:$0xff] %v444_v36  ;;  %v404_v37 = vpop.f32.mrb[9].mxu0  ;;  %v446_v38 = vpop.f32.mrb[7].mxu1 }
 0x17d   : > { %482 = vst [vmem:[%s1221_s28 + $0x48] sm:$0xff] %v404_v37  ;;  %496 = vst [vmem:[%s1221_s28 + $0xb8] sm:$0xff] %v446_v38 }
 0x17f   : > { %v408_v39 = vpop.f32.mrb[10].mxu0  ;;  %v450_v40 = vpop.f32.mrb[8].mxu1 }
 0x180   : > { %483 = vst [vmem:[%s1221_s28 + $0x50] sm:$0xff] %v408_v39  ;;  %497 = vst [vmem:[%s1221_s28 + $0xc0] sm:$0xff] %v450_v40  ;;  %v410_v41 = vpop.f32.mrb[11].mxu0  ;;  %v452_v42 = vpop.f32.mrb[9].mxu1 }
 0x181   : > { %484 = vst [vmem:[%s1221_s28 + $0x58] sm:$0xff] %v410_v41  ;;  %498 = vst [vmem:[%s1221_s28 + $0xc8] sm:$0xff] %v452_v42 }
 0x183   : > { %v414_v43 = vpop.f32.mrb[12].mxu0  ;;  %v456_v44 = vpop.f32.mrb[10].mxu1 }
 0x184   : > { %485 = vst [vmem:[%s1221_s28 + $0x60] sm:$0xff] %v414_v43  ;;  %499 = vst [vmem:[%s1221_s28 + $0xd0] sm:$0xff] %v456_v44  ;;  %v416_v45 = vpop.f32.mrb[13].mxu0  ;;  %v458_v46 = vpop.f32.mrb[11].mxu1 }
 0x185   : > { %486 = vst [vmem:[%s1221_s28 + $0x68] sm:$0xff] %v416_v45  ;;  %500 = vst [vmem:[%s1221_s28 + $0xd8] sm:$0xff] %v458_v46 }
 0x187   : > { %v420_v47 = vpop.f32.mrb[14].mxu0  ;;  %v462_v48 = vpop.f32.mrb[12].mxu1  ;;  %511 = sbr.rel (!%p1060_p4) target bundleno = 454 (0x1c6), region = 32 }
 0x188   : > { %487 = vst [vmem:[%s1221_s28 + $0x70] sm:$0xff] %v420_v47  ;;  %501 = vst [vmem:[%s1221_s28 + $0xe0] sm:$0xff] %v462_v48  ;;  %v422_v49 = vpop.f32.mrb[15].mxu0  ;;  %v464_v50 = vpop.f32.mrb[13].mxu1 }
 0x189   : > { %488 = vst [vmem:[%s1221_s28 + $0x78] sm:$0xff] %v422_v49  ;;  %502 = vst [vmem:[%s1221_s28 + $0xe8] sm:$0xff] %v464_v50 }
 0x18b   : > { %v468_v51 = vpop.f32.mrb[14].mxu1 }
 0x18c   : > { %503 = vst [vmem:[%s1221_s28 + $0xf0] sm:$0xff] %v468_v51  ;;  %v470_v52 = vpop.f32.mrb[15].mxu1 }
 0x18d   : > { %504 = vst [vmem:[%s1221_s28 + $0xf8] sm:$0xff] %v470_v52 }
 0x18e   : > { %s1411_s9 = smov (!%p514_p8, %s513_s9), 16 }
 0x18f   : > { %s783_s5 = sshll.u32 %s1411_s9, 8 }
 0x190   : > { %p771_p9 = scmp.eq.s32.totalorder %s783_s5, 0 }
 0x191   : > { %s1268_s6 = sshrl.u32 (!%p771_p9), %s1411_s9, 4 }
 0x192   : > { %524 = sbr.rel (%p771_p9) target bundleno = 454 (0x1c6), region = 36  ;;  %p772_p10 = scmp.le.s32.totalorder (!%p771_p9), %s1268_s6, 0 }
 0x199   : > { %681 = sbr.rel (%p772_p10) target bundleno = 433 (0x1b1), region = 84  ;;  %s1402_s12 = smov (!%p772_p10), %s1262_s4 }
 0x19a   : > { %s1403_s17 = smov (!%p772_p10), %s1221_s28  ;;  %s1277_s18 = smov (!%p772_p10), 0  }
 0x19b   : > { %s1279_s7 = smov (!%p772_p10), 0  }
 0x1a0 LB: >> { %v537_v53 = vld [vmem:[%s991_s17] sm:$0xff]  ;;  %v539_v54 = vld [vmem:[%s991_s17 + $0x10] sm:$0xff]  ;;  %s601_s8 = sadd.s32 1, %s995_s18  ;;  %v569_v5 = vld [vmem:[%s991_s17 + $0x8] sm:$0xff]  ;;  %s531_s7 = sadd.s32 1, %s999_s7   ;;  %s999_s7 = sphi %s1279_s7, %s531_s7   ;;  %s995_s18 = sphi %s1277_s18, %s1406_s18   ;;  %s991_s17 = sphi %s1403_s17, %s1405_s17   ;;  %s987_s12 = sphi %s1402_s12, %s1404_s12  }
 0x1a1   : >> { %v541_v55 = vld [vmem:[%s991_s17 + $0x20] sm:$0xff]  ;;  %538 = vst [vmem:[%s987_s12] sm:$0xff] %v537_v53  ;;  %540 = vst [vmem:[%s987_s12 + $0x10] sm:$0xff] %v539_v54  ;;  %v543_v56 = vld [vmem:[%s991_s17 + $0x30] sm:$0xff]  ;;  %p602_p11 = scmp.ge.s32.totalorder %s601_s8, %s1268_s6  ;;  %p530_p12 = scmp.ge.s32.totalorder %s531_s7, %s1268_s6 }
 0x1a2   : >> { %542 = vst [vmem:[%s987_s12 + $0x20] sm:$0xff] %v541_v55  ;;  %v545_v57 = vld [vmem:[%s991_s17 + $0x40] sm:$0xff]  ;;  %v547_v58 = vld [vmem:[%s991_s17 + $0x50] sm:$0xff]  ;;  %544 = vst [vmem:[%s987_s12 + $0x30] sm:$0xff] %v543_v56 }
 0x1a3   : >> { %546 = vst [vmem:[%s987_s12 + $0x40] sm:$0xff] %v545_v57  ;;  %548 = vst [vmem:[%s987_s12 + $0x50] sm:$0xff] %v547_v58  ;;  %v549_v59 = vld [vmem:[%s991_s17 + $0x60] sm:$0xff]  ;;  %v551_v60 = vld [vmem:[%s991_s17 + $0x70] sm:$0xff]  ;;  %s1413_s8 = smov (%p602_p11, %s601_s8), 0 }
 0x1a4   : >> { %v553_v61 = vld [vmem:[%s991_s17 + $0x80] sm:$0xff]  ;;  %550 = vst [vmem:[%s987_s12 + $0x60] sm:$0xff] %v549_v59  ;;  %552 = vst [vmem:[%s987_s12 + $0x70] sm:$0xff] %v551_v60  ;;  %v555_v62 = vld [vmem:[%s991_s17 + $0x90] sm:$0xff]  ;;  %s773_s11 = sshll.u32 %s1413_s8, 8  ;;  %s1406_s18 = smov %s1413_s8 }
 0x1a5   : >> { %554 = vst [vmem:[%s987_s12 + $0x80] sm:$0xff] %v553_v61  ;;  %v557_v63 = vld [vmem:[%s991_s17 + $0xa0] sm:$0xff]  ;;  %v559_v0 = vld [vmem:[%s991_s17 + $0xb0] sm:$0xff]  ;;  %556 = vst [vmem:[%s987_s12 + $0x90] sm:$0xff] %v555_v62  ;;  %s1335_s14 = scalar_lea.vmem %s1221_s28, %s773_s11 [#allocation2]   ;;  %s607_s15 = scalar_lea.vmem %s1262_s4, %s773_s11  }
 0x1a6   : >> { %558 = vst [vmem:[%s987_s12 + $0xa0] sm:$0xff] %v557_v63  ;;  %560 = vst [vmem:[%s987_s12 + $0xb0] sm:$0xff] %v559_v0  ;;  %v561_v1 = vld [vmem:[%s991_s17 + $0xc0] sm:$0xff]  ;;  %v563_v2 = vld [vmem:[%s991_s17 + $0xd0] sm:$0xff] }
 0x1a7   : >> { %v565_v3 = vld [vmem:[%s991_s17 + $0xe0] sm:$0xff]  ;;  %562 = vst [vmem:[%s987_s12 + $0xc0] sm:$0xff] %v561_v1  ;;  %564 = vst [vmem:[%s987_s12 + $0xd0] sm:$0xff] %v563_v2  ;;  %v567_v4 = vld [vmem:[%s991_s17 + $0xf0] sm:$0xff] }
 0x1a8   : >> { %566 = vst [vmem:[%s987_s12 + $0xe0] sm:$0xff] %v565_v3  ;;  %v571_v6 = vld [vmem:[%s991_s17 + $0x18] sm:$0xff]  ;;  %568 = vst [vmem:[%s987_s12 + $0xf0] sm:$0xff] %v567_v4  ;;  %v573_v7 = vld [vmem:[%s991_s17 + $0x28] sm:$0xff] }
 0x1a9   : >> { %570 = vst [vmem:[%s987_s12 + $0x8] sm:$0xff] %v569_v5  ;;  %572 = vst [vmem:[%s987_s12 + $0x18] sm:$0xff] %v571_v6  ;;  %v575_v8 = vld [vmem:[%s991_s17 + $0x38] sm:$0xff]  ;;  %v577_v9 = vld [vmem:[%s991_s17 + $0x48] sm:$0xff] }
 0x1aa   : >> { %574 = vst [vmem:[%s987_s12 + $0x28] sm:$0xff] %v573_v7  ;;  %576 = vst [vmem:[%s987_s12 + $0x38] sm:$0xff] %v575_v8  ;;  %v579_v10 = vld [vmem:[%s991_s17 + $0x58] sm:$0xff]  ;;  %v581_v11 = vld [vmem:[%s991_s17 + $0x68] sm:$0xff]  ;;  %533 = sbr.rel (!%p530_p12) target bundleno = 416 (0x1a0), region = 90 }
 0x1ab   : >> { %578 = vst [vmem:[%s987_s12 + $0x48] sm:$0xff] %v577_v9  ;;  %v583_v12 = vld [vmem:[%s991_s17 + $0x78] sm:$0xff]  ;;  %580 = vst [vmem:[%s987_s12 + $0x58] sm:$0xff] %v579_v10  ;;  %v585_v13 = vld [vmem:[%s991_s17 + $0x88] sm:$0xff] }
 0x1ac   : >> { %582 = vst [vmem:[%s987_s12 + $0x68] sm:$0xff] %v581_v11  ;;  %584 = vst [vmem:[%s987_s12 + $0x78] sm:$0xff] %v583_v12  ;;  %v587_v14 = vld [vmem:[%s991_s17 + $0x98] sm:$0xff]  ;;  %v589_v15 = vld [vmem:[%s991_s17 + $0xa8] sm:$0xff] }
 0x1ad   : >> { %586 = vst [vmem:[%s987_s12 + $0x88] sm:$0xff] %v585_v13  ;;  %588 = vst [vmem:[%s987_s12 + $0x98] sm:$0xff] %v587_v14  ;;  %v591_v16 = vld [vmem:[%s991_s17 + $0xb8] sm:$0xff]  ;;  %v593_v17 = vld [vmem:[%s991_s17 + $0xc8] sm:$0xff] }
 0x1ae   : >> { %590 = vst [vmem:[%s987_s12 + $0xa8] sm:$0xff] %v589_v15  ;;  %v595_v18 = vld [vmem:[%s991_s17 + $0xd8] sm:$0xff]  ;;  %592 = vst [vmem:[%s987_s12 + $0xb8] sm:$0xff] %v591_v16  ;;  %v597_v19 = vld [vmem:[%s991_s17 + $0xe8] sm:$0xff] }
 0x1af   : >> { %594 = vst [vmem:[%s987_s12 + $0xc8] sm:$0xff] %v593_v17  ;;  %596 = vst [vmem:[%s987_s12 + $0xd8] sm:$0xff] %v595_v18  ;;  %v599_v20 = vld [vmem:[%s991_s17 + $0xf8] sm:$0xff]  ;;  %s1405_s17 = smov %s1335_s14 }
 0x1b0   : >> { %598 = vst [vmem:[%s987_s12 + $0xe8] sm:$0xff] %v597_v19  ;;  %600 = vst [vmem:[%s987_s12 + $0xf8] sm:$0xff] %v599_v20  ;;  %s1404_s12 = smov %s607_s15 }
 0x1b1 PF: > { %s1376_s19 = sand.u32 15, %s1411_s9   ;;  %s786_s20 = sshll.u32 %s1268_s6, 8 }
 0x1b2   : > { %s1380_s21 = scalar_lea.vmem %s1221_s28, %s786_s20 [#allocation2]   ;;  %s614_s23 = scalar_lea.vmem %s1262_s4, %s786_s20  }
 0x1b3   : > { %p778_p13 = scmp.le.s32.totalorder %s1376_s19, 0 }
 0x1b4   : > { %s1001_s24 = smov (!%p778_p13), %s614_s23   ;;  %s1005_s25 = smov (!%p778_p13), %s1380_s21  }
 0x1b5   : > { %695 = sbr.rel (%p778_p13) target bundleno = 454 (0x1c6), region = 95  ;;  %s1009_s26 = smov (!%p778_p13), 0  }
 0x1b6   : > { %s1013_s22 = smov (!%p778_p13), 0  }
 0x1bc LB: >> { %v624_v21 = vld [vmem:[%s1007_s25] sm:$0xff]  ;;  %v626_v22 = vld [vmem:[%s1007_s25 + $0x8] sm:$0xff]  ;;  %s628_s27 = sadd.s32 1, %s1011_s26  ;;  %s618_s22 = sadd.s32 1, %s1015_s22   ;;  %s1015_s22 = sphi %s1013_s22, %s618_s22   ;;  %s1011_s26 = sphi %s1009_s26, %s1010_s26   ;;  %s1007_s25 = sphi %s1005_s25, %s633_s25   ;;  %s1003_s24 = sphi %s1001_s24, %s634_s24  }
 0x1bd   : >> { %625 = vst [vmem:[%s1003_s24] sm:$0xff] %v624_v21  ;;  %627 = vst [vmem:[%s1003_s24 + $0x8] sm:$0xff] %v626_v22  ;;  %p629_p0 = scmp.ge.s32.totalorder %s628_s27, %s1376_s19  ;;  %p617_p1 = scmp.ge.s32.totalorder %s618_s22, %s1376_s19 }
 0x1bf   : >> { %s1415_s27 = smov (%p629_p0, %s628_s27), 0  ;;  %620 = sbr.rel (!%p617_p1) target bundleno = 444 (0x1bc), region = 101 }
 0x1c0   : >> { %s779_s28 = sshll.u32 %s1415_s27, 4  ;;  %s1010_s26 = smov %s1415_s27  }
 0x1c1   : >> { %s633_s25 = scalar_lea.vmem %s1380_s21, %s779_s28 [#allocation2]   ;;  %s634_s24 = scalar_lea.vmem %s614_s23, %s779_s28  }
 0x1c6 PF: > { %p9_p2 = scmp.ge.s32.totalorder %s1050_s13, 6   ;;  %s1407_s9 = smov %s979_s10 }
 0x1c7   : > { %s1408_s10 = smov %s1058_s16  ;;  %s1409_s11 = smov %s1050_s13 }
 0x1c8   :  { %11 = sbr.rel (!%p9_p2) target bundleno = 2 (0x2), region = 112 }

</bundles_post_ra>
